<compile_context>
chip_gen: v7x
topology: tpu7x:2x2x1
jax: 0.10.0
libtpu: 0.0.40
codegen_flags: <defaults>
</compile_context>

<pallas_src>
import math

import jax
import jax.numpy as jnp
from jax import lax
from jax.experimental import pallas as pl
from jax.experimental.pallas import tpu as pltpu


def _d3_graph_conv_kernel(means_ref, x_cur_ref, x_prev_ref, x_next_ref,
                          edge_ref, w_ref, bias_ref, out_ref):
    t = pl.program_id(0)
    T = pl.num_programs(0)
    i = pl.program_id(1)

    N, Cin = x_cur_ref.shape
    block_n, Cout = out_ref.shape

    row0 = pl.multiple_of(i * block_n, block_n)
    x_cur = x_cur_ref[...]                         # (N, Cin)  all source nodes
    x_tile = x_cur_ref[pl.ds(row0, block_n), :]    # (block_n, Cin) this row tile
    x_prev = x_prev_ref[...]                       # x[t-1] tile (clamped at t==0)
    x_next = x_next_ref[...]                       # x[t+1] tile (clamped at t==T-1)

    mean1 = means_ref[0]   # mean(x[:-1])
    mean2 = means_ref[1]   # mean(x[1:])

    def cosine(a, b):
        dots = jnp.sum(a * b, axis=-1, keepdims=True)
        sa = jnp.sum(a * a, axis=-1, keepdims=True)
        sb = jnp.sum(b * b, axis=-1, keepdims=True)
        # rsqrt runs on the EUP; max(|a||b|, 1e-8) == sqrt(max(sa*sb, 1e-16)).
        return dots * lax.rsqrt(jnp.maximum(sa * sb, 1e-16))

    # att[t-1] feeds forward into out[t]   (absent at t == 0)
    att_f = cosine(x_prev - mean1, x_tile - mean2)
    att_f = jnp.where(t > 0, att_f, 0.0)
    # att[t]   feeds backward into out[t]  (absent at t == T-1)
    att_b = cosine(x_tile - mean1, x_next - mean2)
    att_b = jnp.where(t < T - 1, att_b, 0.0)

    # One fused MXU pass: stacked LHS  x  [root_w | s_w | t_w]
    #   rows [0:N)                       -> x[t] (all nodes, for aggregation)
    #   rows [N:N+bn)                    -> x[t] row tile (root term)
    #   rows [N+bn:N+2bn)                -> att[t-1] * x[t-1] tile (forward term)
    #   rows [N+2bn:N+3bn)               -> att[t]   * x[t+1] tile (backward term)
    big_lhs = jnp.concatenate(
        [x_cur, x_tile, att_f * x_prev, att_b * x_next], axis=0)
    z = jnp.dot(big_lhs, w_ref[...], preferred_element_type=jnp.float32)

    xs = z[:N, Cout:2 * Cout]                          # x[t]          @ s_w (all nodes)
    root = z[N:N + block_n, :Cout]                     # x[t] tile     @ root_w
    fwd = z[N + block_n:N + 2 * block_n, 2 * Cout:]    # att*x[t-1]    @ t_w
    bwd = z[N + 2 * block_n:, 2 * Cout:]               # att*x[t+1]    @ t_w

    edge = edge_ref[...].astype(jnp.float32)           # (block_n, N); 0/1 exact in bf16
    agg = jnp.dot(edge, xs, preferred_element_type=jnp.float32)
    deg = jnp.maximum(jnp.sum(edge, axis=-1, keepdims=True), 1.0)

    # Single store of the final result (no read-modify-write passes).
    out_ref[...] = root + agg / deg + fwd + bwd + bias_ref[...]
    # TODO(synk): F.dropout with p > 0 in training mode is not implemented; the
    # module default (p=0 / eval mode) makes it the identity, which is what we do.


def d3_graph_conv(x, edge_index, root_w, s_w, t_w, bias, *,
                  block_n=None, edge_dtype=jnp.bfloat16):
    x = x.astype(jnp.float32)
    T, N, Cin = x.shape
    Cout = root_w.shape[1]

    if block_n is None:
        block_n = N if N <= 256 else 128
    assert N % block_n == 0, "N must be divisible by block_n"
    nb = N // block_n

    # Fused RHS weight and lane-broadcastable bias (layout plumbing in XLA).
    w_all = jnp.concatenate([root_w, s_w, t_w], axis=1).astype(jnp.float32)
    bias2 = bias.reshape(1, Cout).astype(jnp.float32)
    edge = edge_index.astype(edge_dtype)

    # Global scalars for the temporal attention (cheap XLA reduction); T == 1
    # would otherwise be a NaN mean over zero elements — the temporal term is
    # fully masked out in that case anyway.
    if T >= 2:
        means = jnp.stack([jnp.mean(x[:-1]), jnp.mean(x[1:])]).astype(jnp.float32)
    else:
        means = jnp.zeros((2,), jnp.float32)

    in_specs = [
        pl.BlockSpec(memory_space=pltpu.MemorySpace.SMEM),            # means (scalars)
        pl.BlockSpec((None, N, Cin), lambda t, i: (t, 0, 0)),         # x[t] (all nodes)
        pl.BlockSpec((None, block_n, Cin),                            # x[t-1] row tile
                     lambda t, i: (jnp.maximum(t - 1, 0), i, 0)),
        pl.BlockSpec((None, block_n, Cin),                            # x[t+1] row tile
                     lambda t, i: (jnp.minimum(t + 1, T - 1), i, 0)),
        pl.BlockSpec((None, block_n, N), lambda t, i: (t, i, 0)),     # edge[t] row tile
        pl.BlockSpec((Cin, 3 * Cout), lambda t, i: (0, 0)),           # fused weights
        pl.BlockSpec((1, Cout), lambda t, i: (0, 0)),                 # bias
    ]
    out_spec = pl.BlockSpec((None, block_n, Cout), lambda t, i: (t, i, 0))

    # VMEM budget: double-buffered tiles + headroom, kept well under v7x's 64 MiB.
    esz = jnp.dtype(edge_dtype).itemsize
    tile_bytes = (block_n * N * esz + (N + 2 * block_n) * Cin * 4
                  + Cin * 3 * Cout * 4 + Cout * 4 + block_n * Cout * 4)
    vmem_limit = int(min(max(4 * tile_bytes + (4 << 20), 16 << 20), 48 << 20))

    flops = (2 * T * N * N * Cout
             + 2 * T * nb * (N + 3 * block_n) * Cin * 3 * Cout)
    bytes_accessed = int(3 * x.size * 4 + edge.size * esz
                         + w_all.size * 4 + T * N * Cout * 4)

    return pl.pallas_call(
        _d3_graph_conv_kernel,
        out_shape=jax.ShapeDtypeStruct((T, N, Cout), jnp.float32),
        grid=(T, nb),
        in_specs=in_specs,
        out_specs=out_spec,
        compiler_params=pltpu.CompilerParams(
            dimension_semantics=("parallel", "parallel"),
            vmem_limit_bytes=vmem_limit,
        ),
        cost_estimate=pl.CostEstimate(
            flops=flops,
            transcendentals=2 * T * N,
            bytes_accessed=bytes_accessed,
        ),
    )(means, x, x, x, edge, w_all, bias2)


def d3_graph_conv_ref(x, edge_index, root_w, s_w, t_w, bias):
    """Pure-JAX reference mirroring the PyTorch forward exactly."""
    agg = jnp.einsum('tnm,tmd->tnd', edge_index, x @ s_w)
    deg = jnp.maximum(jnp.sum(edge_index, axis=-1, keepdims=True), 1.0)
    out = agg / deg
    xa, xb = x[:-1], x[1:]
    a = xa - jnp.mean(xa)
    b = xb - jnp.mean(xb)
    cos = jnp.sum(a * b, -1, keepdims=True) / jnp.maximum(
        jnp.sqrt(jnp.sum(a * a, -1, keepdims=True)) *
        jnp.sqrt(jnp.sum(b * b, -1, keepdims=True)), 1e-8)
    fwd = (cos * xa) @ t_w
    bwd = (cos * xb) @ t_w
    zero = jnp.zeros((1,) + fwd.shape[1:], fwd.dtype)
    out = out + jnp.concatenate([zero, fwd], 0) + jnp.concatenate([bwd, zero], 0)
    return x @ root_w + out + bias


if __name__ == "__main__":
    T, N, Cin, Cout = 4, 16, 8, 16
    key = jax.random.PRNGKey(0)
    kx, ke, k1, k2, k3, k4 = jax.random.split(key, 6)

    x = jax.random.normal(kx, (T, N, Cin), jnp.float32)
    edge_index = (jax.random.uniform(ke, (T, N, N)) > 0.5).astype(jnp.float32)

    # deterministic parameter init matching reset_parameters(): U(-stdv, stdv)
    stdv = 1.0 / math.sqrt(Cin)
    root_w = jax.random.uniform(k1, (Cin, Cout), jnp.float32, -stdv, stdv)
    s_w = jax.random.uniform(k2, (Cin, Cout), jnp.float32, -stdv, stdv)
    t_w = jax.random.uniform(k3, (Cin, Cout), jnp.float32, -stdv, stdv)
    bias = jax.random.uniform(k4, (Cout,), jnp.float32, -stdv, stdv)

    out = d3_graph_conv(x, edge_index, root_w, s_w, t_w, bias)
    out = jax.block_until_ready(out)

    ref = d3_graph_conv_ref(x, edge_index, root_w, s_w, t_w, bias)
    assert out.shape == (T, N, Cout)
    max_err = float(jnp.max(jnp.abs(out - ref)))
    assert jnp.allclose(out, ref, rtol=1e-3, atol=1e-3), f"max abs err = {max_err}"

    print("KERNEL_OK")
</pallas_src>

<mosaic_0001>
module attributes {stable_mosaic.version = 11 : i64} {
  func.func @_d3_graph_conv_kernel(%arg0: i32, %arg1: i32, %arg2: memref<2xf32, #tpu.memory_space<smem>>, %arg3: memref<1x16x8xf32, #tpu.memory_space<vmem>>, %arg4: memref<1x16x8xf32, #tpu.memory_space<vmem>>, %arg5: memref<1x16x8xf32, #tpu.memory_space<vmem>>, %arg6: memref<1x16x16xbf16, #tpu.memory_space<vmem>>, %arg7: memref<8x48xf32, #tpu.memory_space<vmem>>, %arg8: memref<1x16xf32, #tpu.memory_space<vmem>>, %arg9: memref<1x16x16xf32, #tpu.memory_space<vmem>>) attributes {dimension_semantics = [#tpu.dimension_semantics<parallel>, #tpu.dimension_semantics<parallel>], iteration_bounds = array<i64: 4, 1>, scalar_prefetch = 0 : i64, scratch_operands = 0 : i64, tpu.core_type = #tpu.core_type<tc>, window_params = [{transform_indices = @transform_0, window_bounds = array<i64: 2>}, {transform_indices = @transform_1, window_bounds = array<i64: 1, 16, 8>}, {transform_indices = @transform_2, window_bounds = array<i64: 1, 16, 8>}, {transform_indices = @transform_3, window_bounds = array<i64: 1, 16, 8>}, {transform_indices = @transform_4, window_bounds = array<i64: 1, 16, 16>}, {pipeline_mode = #tpu.pipeline_mode<synchronous>, transform_indices = @transform_5, window_bounds = array<i64: 8, 48>}, {pipeline_mode = #tpu.pipeline_mode<synchronous>, transform_indices = @transform_6, window_bounds = array<i64: 1, 16>}, {transform_indices = @transform_7, window_bounds = array<i64: 1, 16, 16>}]} {
    %c16_i32 = arith.constant 16 : i32
    %0 = arith.muli %arg1, %c16_i32 : i32
    %1 = tpu.assume_multiple %0, 16 : i32
    %c0 = arith.constant 0 : index
    %c0_0 = arith.constant 0 : index
    %c0_1 = arith.constant 0 : index
    %2 = vector.load %arg3[%c0, %c0_0, %c0_1] : memref<1x16x8xf32, #tpu.memory_space<vmem>>, vector<1x16x8xf32>
    %3 = vector.shape_cast %2 : vector<1x16x8xf32> to vector<16x8xf32>
    %c0_2 = arith.constant 0 : index
    %4 = arith.index_cast %1 : i32 to index
    %c0_3 = arith.constant 0 : index
    %5 = vector.load %arg3[%c0_2, %4, %c0_3] : memref<1x16x8xf32, #tpu.memory_space<vmem>>, vector<1x16x8xf32>
    %6 = vector.shape_cast %5 : vector<1x16x8xf32> to vector<16x8xf32>
    %c0_4 = arith.constant 0 : index
    %c0_5 = arith.constant 0 : index
    %c0_6 = arith.constant 0 : index
    %7 = vector.load %arg4[%c0_4, %c0_5, %c0_6] : memref<1x16x8xf32, #tpu.memory_space<vmem>>, vector<1x16x8xf32>
    %8 = vector.shape_cast %7 : vector<1x16x8xf32> to vector<16x8xf32>
    %c0_7 = arith.constant 0 : index
    %c0_8 = arith.constant 0 : index
    %c0_9 = arith.constant 0 : index
    %9 = vector.load %arg5[%c0_7, %c0_8, %c0_9] : memref<1x16x8xf32, #tpu.memory_space<vmem>>, vector<1x16x8xf32>
    %10 = vector.shape_cast %9 : vector<1x16x8xf32> to vector<16x8xf32>
    %c0_10 = arith.constant 0 : index
    %11 = memref.load %arg2[%c0_10] : memref<2xf32, #tpu.memory_space<smem>>
    %c1 = arith.constant 1 : index
    %12 = memref.load %arg2[%c1] : memref<2xf32, #tpu.memory_space<smem>>
    %13 = vector.broadcast %11 : f32 to vector<16x8xf32>
    %14 = arith.subf %8, %13 : vector<16x8xf32>
    %15 = vector.broadcast %12 : f32 to vector<16x8xf32>
    %16 = arith.subf %6, %15 : vector<16x8xf32>
    %17 = arith.mulf %14, %16 : vector<16x8xf32>
    %cst = arith.constant dense<0.000000e+00> : vector<16xf32>
    %18 = vector.multi_reduction <add>, %17, %cst [1] : vector<16x8xf32> to vector<16xf32>
    %19 = vector.shape_cast %18 : vector<16xf32> to vector<16x1xf32>
    %20 = arith.mulf %14, %14 : vector<16x8xf32>
    %cst_11 = arith.constant dense<0.000000e+00> : vector<16xf32>
    %21 = vector.multi_reduction <add>, %20, %cst_11 [1] : vector<16x8xf32> to vector<16xf32>
    %22 = vector.shape_cast %21 : vector<16xf32> to vector<16x1xf32>
    %23 = arith.mulf %16, %16 : vector<16x8xf32>
    %cst_12 = arith.constant dense<0.000000e+00> : vector<16xf32>
    %24 = vector.multi_reduction <add>, %23, %cst_12 [1] : vector<16x8xf32> to vector<16xf32>
    %25 = vector.shape_cast %24 : vector<16xf32> to vector<16x1xf32>
    %26 = arith.mulf %22, %25 : vector<16x1xf32>
    %cst_13 = arith.constant 1.000000e-16 : f32
    %27 = vector.broadcast %cst_13 : f32 to vector<16x1xf32>
    %28 = arith.maximumf %26, %27 : vector<16x1xf32>
    %29 = math.rsqrt %28 : vector<16x1xf32>
    %30 = arith.mulf %19, %29 : vector<16x1xf32>
    %c0_i32 = arith.constant 0 : i32
    %31 = arith.cmpi sgt, %arg0, %c0_i32 : i32
    %cst_14 = arith.constant 0.000000e+00 : f32
    %32 = vector.broadcast %cst_14 : f32 to vector<16x1xf32>
    %33 = arith.select %31, %30, %32 : vector<16x1xf32>
    %34 = vector.broadcast %11 : f32 to vector<16x8xf32>
    %35 = arith.subf %6, %34 : vector<16x8xf32>
    %36 = vector.broadcast %12 : f32 to vector<16x8xf32>
    %37 = arith.subf %10, %36 : vector<16x8xf32>
    %38 = arith.mulf %35, %37 : vector<16x8xf32>
    %cst_15 = arith.constant dense<0.000000e+00> : vector<16xf32>
    %39 = vector.multi_reduction <add>, %38, %cst_15 [1] : vector<16x8xf32> to vector<16xf32>
    %40 = vector.shape_cast %39 : vector<16xf32> to vector<16x1xf32>
    %41 = arith.mulf %35, %35 : vector<16x8xf32>
    %cst_16 = arith.constant dense<0.000000e+00> : vector<16xf32>
    %42 = vector.multi_reduction <add>, %41, %cst_16 [1] : vector<16x8xf32> to vector<16xf32>
    %43 = vector.shape_cast %42 : vector<16xf32> to vector<16x1xf32>
    %44 = arith.mulf %37, %37 : vector<16x8xf32>
    %cst_17 = arith.constant dense<0.000000e+00> : vector<16xf32>
    %45 = vector.multi_reduction <add>, %44, %cst_17 [1] : vector<16x8xf32> to vector<16xf32>
    %46 = vector.shape_cast %45 : vector<16xf32> to vector<16x1xf32>
    %47 = arith.mulf %43, %46 : vector<16x1xf32>
    %cst_18 = arith.constant 1.000000e-16 : f32
    %48 = vector.broadcast %cst_18 : f32 to vector<16x1xf32>
    %49 = arith.maximumf %47, %48 : vector<16x1xf32>
    %50 = math.rsqrt %49 : vector<16x1xf32>
    %51 = arith.mulf %40, %50 : vector<16x1xf32>
    %c3_i32 = arith.constant 3 : i32
    %52 = arith.cmpi slt, %arg0, %c3_i32 : i32
    %cst_19 = arith.constant 0.000000e+00 : f32
    %53 = vector.broadcast %cst_19 : f32 to vector<16x1xf32>
    %54 = arith.select %52, %51, %53 : vector<16x1xf32>
    %55 = vector.broadcast %33 : vector<16x1xf32> to vector<16x8xf32>
    %56 = arith.mulf %55, %8 : vector<16x8xf32>
    %57 = vector.broadcast %54 : vector<16x1xf32> to vector<16x8xf32>
    %58 = arith.mulf %57, %10 : vector<16x8xf32>
    %59 = tpu.concatenate %3, %6, %56, %58 in 0 : vector<16x8xf32>, vector<16x8xf32>, vector<16x8xf32>, vector<16x8xf32> -> vector<64x8xf32>
    %c0_20 = arith.constant 0 : index
    %c0_21 = arith.constant 0 : index
    %60 = vector.load %arg7[%c0_20, %c0_21] : memref<8x48xf32, #tpu.memory_space<vmem>>, vector<8x48xf32>
    %cst_22 = arith.constant dense<0.000000e+00> : vector<64x48xf32>
    %61 = tpu.matmul %59, %60, %cst_22 {dimension_numbers = #tpu.dot_dimension_numbers<[1], [0], [0], [1], [0, 0, 1, 1], [], []>} : vector<64x8xf32>, vector<8x48xf32>, vector<64x48xf32> -> vector<64x48xf32>
    %62 = vector.extract_strided_slice %61 {offsets = [0, 16], sizes = [16, 16], strides = [1, 1]} : vector<64x48xf32> to vector<16x16xf32>
    %63 = vector.extract_strided_slice %61 {offsets = [16, 0], sizes = [16, 16], strides = [1, 1]} : vector<64x48xf32> to vector<16x16xf32>
    %64 = vector.extract_strided_slice %61 {offsets = [32, 32], sizes = [16, 16], strides = [1, 1]} : vector<64x48xf32> to vector<16x16xf32>
    %65 = vector.extract_strided_slice %61 {offsets = [48, 32], sizes = [16, 16], strides = [1, 1]} : vector<64x48xf32> to vector<16x16xf32>
    %c0_23 = arith.constant 0 : index
    %c0_24 = arith.constant 0 : index
    %c0_25 = arith.constant 0 : index
    %66 = vector.load %arg6[%c0_23, %c0_24, %c0_25] : memref<1x16x16xbf16, #tpu.memory_space<vmem>>, vector<1x16x16xbf16>
    %67 = vector.shape_cast %66 : vector<1x16x16xbf16> to vector<16x16xbf16>
    %68 = arith.extf %67 : vector<16x16xbf16> to vector<16x16xf32>
    %cst_26 = arith.constant dense<0.000000e+00> : vector<16x16xf32>
    %69 = tpu.matmul %68, %62, %cst_26 {dimension_numbers = #tpu.dot_dimension_numbers<[1], [0], [0], [1], [0, 0, 1, 1], [], []>} : vector<16x16xf32>, vector<16x16xf32>, vector<16x16xf32> -> vector<16x16xf32>
    %cst_27 = arith.constant dense<0.000000e+00> : vector<16xf32>
    %70 = vector.multi_reduction <add>, %68, %cst_27 [1] : vector<16x16xf32> to vector<16xf32>
    %71 = vector.shape_cast %70 : vector<16xf32> to vector<16x1xf32>
    %cst_28 = arith.constant 1.000000e+00 : f32
    %72 = vector.broadcast %cst_28 : f32 to vector<16x1xf32>
    %73 = arith.maximumf %71, %72 : vector<16x1xf32>
    %74 = vector.broadcast %73 : vector<16x1xf32> to vector<16x16xf32>
    %75 = arith.divf %69, %74 : vector<16x16xf32>
    %76 = arith.addf %63, %75 : vector<16x16xf32>
    %77 = arith.addf %76, %64 : vector<16x16xf32>
    %78 = arith.addf %77, %65 : vector<16x16xf32>
    %c0_29 = arith.constant 0 : index
    %c0_30 = arith.constant 0 : index
    %79 = vector.load %arg8[%c0_29, %c0_30] : memref<1x16xf32, #tpu.memory_space<vmem>>, vector<1x16xf32>
    %80 = vector.broadcast %79 : vector<1x16xf32> to vector<16x16xf32>
    %81 = arith.addf %78, %80 : vector<16x16xf32>
    %c0_31 = arith.constant 0 : index
    %c0_32 = arith.constant 0 : index
    %c0_33 = arith.constant 0 : index
    %82 = vector.load %arg9[%c0_31, %c0_32, %c0_33] : memref<1x16x16xf32, #tpu.memory_space<vmem>>, vector<1x16x16xf32>
    %83 = vector.shape_cast %82 : vector<1x16x16xf32> to vector<16x16xf32>
    %84 = vector.shape_cast %81 : vector<16x16xf32> to vector<1x16x16xf32>
    tpu.vector_store %arg9[%c0_31, %c0_32, %c0_33], %84 {strides = array<i32>} : memref<1x16x16xf32, #tpu.memory_space<vmem>>, vector<1x16x16xf32>,
    return
  }
  func.func @transform_0(%arg0: i32, %arg1: i32) -> i32 {
    %c0_i32 = arith.constant 0 : i32
    %c0_i32_0 = arith.constant 0 : i32
    return %c0_i32 : i32
  }
  func.func @transform_1(%arg0: i32, %arg1: i32) -> (i32, i32, i32) {
    %c0_i32 = arith.constant 0 : i32
    %c0_i32_0 = arith.constant 0 : i32
    %c0_i32_1 = arith.constant 0 : i32
    return %arg0, %c0_i32, %c0_i32_0 : i32, i32, i32
  }
  func.func @transform_2(%arg0: i32, %arg1: i32) -> (i32, i32, i32) {
    %c1_i32 = arith.constant 1 : i32
    %0 = arith.subi %arg0, %c1_i32 : i32
    %c0_i32 = arith.constant 0 : i32
    %1 = arith.maxsi %0, %c0_i32 : i32
    %c0_i32_0 = arith.constant 0 : i32
    %c0_i32_1 = arith.constant 0 : i32
    return %1, %arg1, %c0_i32_0 : i32, i32, i32
  }
  func.func @transform_3(%arg0: i32, %arg1: i32) -> (i32, i32, i32) {
    %c1_i32 = arith.constant 1 : i32
    %0 = arith.addi %arg0, %c1_i32 : i32
    %c3_i32 = arith.constant 3 : i32
    %1 = arith.minsi %0, %c3_i32 : i32
    %c0_i32 = arith.constant 0 : i32
    %c0_i32_0 = arith.constant 0 : i32
    return %1, %arg1, %c0_i32 : i32, i32, i32
  }
  func.func @transform_4(%arg0: i32, %arg1: i32) -> (i32, i32, i32) {
    %c0_i32 = arith.constant 0 : i32
    %c0_i32_0 = arith.constant 0 : i32
    return %arg0, %arg1, %c0_i32 : i32, i32, i32
  }
  func.func @transform_5(%arg0: i32, %arg1: i32) -> (i32, i32) {
    %c0_i32 = arith.constant 0 : i32
    %c0_i32_0 = arith.constant 0 : i32
    %c0_i32_1 = arith.constant 0 : i32
    return %c0_i32, %c0_i32_0 : i32, i32
  }
  func.func @transform_6(%arg0: i32, %arg1: i32) -> (i32, i32) {
    %c0_i32 = arith.constant 0 : i32
    %c0_i32_0 = arith.constant 0 : i32
    %c0_i32_1 = arith.constant 0 : i32
    return %c0_i32, %c0_i32_0 : i32, i32
  }
  func.func @transform_7(%arg0: i32, %arg1: i32) -> (i32, i32, i32) {
    %c0_i32 = arith.constant 0 : i32
    %c0_i32_0 = arith.constant 0 : i32
    return %arg0, %arg1, %c0_i32 : i32, i32, i32
  }
}

</mosaic_0001>

<bundles_post_ra>
// kernel: tpu_custom_call.1
= control target key start
LH: loop header
LB: loop body
LE: loop exit
PB: predicated region body
PF: predicated region fallthrough
CT: control target
= control target key end

     0   :  { %12 = vsyncpa [#allocation4], 0  ;;  %s1525_s0 = inlined_call_operand.vmem [shape: f32[2], index: 0, kind: input, shape index: {}]   ;;  %s1526_s1 = inlined_call_operand.vmem [shape: f32[4,16,8], index: 1, kind: input, shape index: {}]   ;;  %s1527_s2 = inlined_call_operand.vmem [shape: f32[4,16,8], index: 2, kind: input, shape index: {}]   ;;  %s1528_s3 = inlined_call_operand.vmem [shape: f32[4,16,8], index: 3, kind: input, shape index: {}]   ;;  %s1529_s4 = inlined_call_operand.vmem [shape: bf16[4,16,16], index: 4, kind: input, shape index: {}]   ;;  %s1530_s5 = inlined_call_operand.vmem [shape: f32[8,48], index: 5, kind: input, shape index: {}]   ;;  %s1531_s6 = inlined_call_operand.vmem [shape: f32[1,16], index: 6, kind: input, shape index: {}]   ;;  %s1532_s7 = inlined_call_operand.hbm [shape: f32[4,16,16], index: 7, kind: output, shape index: {}]  }
   0x1   :  { %13 = vsyncpa [#allocation3], 0 }
   0x2   :  { %15 = vsyncpa [#allocation3 + $0x1], 0  ;;  %s1312_s24 = smov 0   ;;  %s1314_s25 = smov 0  }
   0x3   :  { %s1316_s26 = smov 0   ;;  %s1318_s27 = smov 0  }
   0x4   :  { %s1320_s28 = smov 0   ;;  %s1322_s29 = smov 0  }
   0x5 LB: > { %s985_s30 = sadd.s32 4294967295, %s1264_s29   ;;  %s986_s8 = sadd.s32 4294967294, %s1264_s29   ;;  %s1264_s29 = sphi %s1322_s29, %s21_s29   ;;  %s1260_s28 = sphi %s1320_s28, %s1542_s28   ;;  %s1256_s27 = sphi %s1318_s27, %s1541_s27   ;;  %s1252_s26 = sphi %s1316_s26, %s1540_s26   ;;  %s1248_s25 = sphi %s1314_s25, %s1539_s25   ;;  %s1244_s24 = sphi %s1312_s24, %s1538_s24  }
   0x6   : > { %s33_s9 = sadd.s32 1, %s1260_s28  ;;  %s227_s10 = sadd.s32 1, %s1252_s26 }
   0x7   : > { %p35_p0 = scmp.ge.s32.totalorder %s33_s9, 4  ;;  %p237_p1 = scmp.ne.s32.totalorder %s1252_s26, %s1248_s25 }
   0x8   : > { %p238_p2 = scmp.eq.s32.totalorder %s985_s30, 3  ;;  %p243_p3 = scmp.ne.s32.totalorder %s1248_s25, %s1244_s24 }
   0x9   : > { %s1544_s9 = smov (%p35_p0, %s33_s9), 0  ;;  %p244_p5 = scmp.eq.s32.totalorder %s986_s8, 3 }
   0xa   : > { %p1352_p4 = por %p238_p2, %p237_p1  ;;  %s222_s12 = ssub.s32 %s1260_s28, %s1544_s9 }
   0xb   : > { %p989_p6 = scmp.ge.s32.totalorder %s1264_s29, 1  ;;  %p225_p7 = scmp.eq.s32.totalorder %s222_s12, 0 }
   0xc   : > { %p1359_p8 = por %p244_p5, %p243_p3  ;;  %p251_p9 = scmp.lt.s32.totalorder %s1264_s29, 5 }
   0xd   : > { %s1365_s14 = scalar_select %p225_p7, %s1252_s26, %s227_s10  }
   0xe   : > { %p1367_p10 = pnand %p989_p6, %p251_p9  ;;  %p1371_p11 = scmp.eq.s32.totalorder %s985_s30, 0 }
   0xf   : > { %s264_s19 = sshll.u32 %s1525_s0, 4  ;;  %s265_s19 = int_to_ptr.vmem [resolvable:$true] %s264_s19 }
  0x10   : > { %p1086_p12 = pneg %p1367_p10  ;;  %s1167_s20 = scalar_lea.vmem %s265_s19, 16 }
  0x11   : > { %p1168_p0 = scmp.ne.s32.totalorder %s265_s19, %s1167_s20  ;;  %p1175_p5 = scmp.lt.s32.totalorder %s265_s19, %s265_s19 }
  0x12   : > { %p1087_p13 = pnand %p1371_p11, %p1086_p12  ;;  %p1176_p6 = scmp.lt.s32.totalorder %s1167_s20, %s1167_s20 }
  0x14   : > { %p1169_p1 = pneg %p1087_p13  ;;  %p1177_p7 = por %p1176_p6, %p1175_p5 }
  0x16   : > { %p1170_p2 = pnand %p1169_p1, %p1168_p0 }
  0x18   : > { %p1171_p3 = pneg %p1170_p2 }
  0x1a   : > { %p1178_p9 = pnand %p1177_p7, %p1171_p3 }
  0x1c   : > { %1181 = shalt.err (!%p1178_p9)
}
  0x1d   : > { %s1266_s21 = smov [#allocation2]   ;;  %342 = sbr.rel (%p1367_p10) target bundleno = 623 (0x26f), region = 48 }
  0x1e   : > { %1089 = dma.vmem_to_smem (!%p1087_p13), %s265_s19, 16, %s1266_s21, [#allocation4]  }
  0x24   : > { %1235 = dma.done.wait (%p1371_p11), [#allocation4], 16  }
  0x25   : > { %1237 = vsyncadd (%p1371_p11), [#allocation4], 4294967280 }
  0x26   : > { %348 = sfence }
  0x27   : > { %v559_v0 = vld [vmem:[%s1530_s5] sm:$0xff]  ;;  %p408_p12 = scmp.lt.s32.totalorder %s1256_s27, 3  ;;  %s1012_s30 = sld [smem:[#allocation2 + $0x1]]  ;;  %vm476_vm0 = vcmask 64512   ;;  %vm701_vm3 = vcmask 130048  }
  0x28   : > { %1053 = vmatprep.subr.mxu0 %v559_v0  ;;  %s466_s8 = sld [smem:[#allocation2]]  ;;  %s997_s10 = sadd.s32 4294967295, %s1256_s27  ;;  %1078 = vmatprep.subr.mxu1 %v559_v0 }
  0x29   : > { %1054 = vmatpush3.msra.mxu0 %v559_v0  ;;  %s1396_s12 = scalar_select %p408_p12, %s1256_s27, 3  ;;  %1079 = vmatpush3.msra.mxu1 %v559_v0 }
  0x2a   : > { %p414_p10 = scmp.gt.s32.totalorder %s997_s10, 0  ;;  %p998_p11 = scmp.lt.s32.totalorder %s997_s10, 3 }
  0x2b   : > { %s1029_s15 = sshll.u32 %s1396_s12, 4  ;;  %s429_s19 = sadd.s32 1, %s1256_s27 }
  0x2c   : > { %s412_s18 = scalar_lea.vmem %s1526_s1, %s1029_s15  ;;  %p1404_p13 = scmp.lt.s32.totalorder %s429_s19, 3 }
  0x2d   : > { %v457_v1 = vld [vmem:[%s412_s18] sm:$0xff]  ;;  %v458_v2 = vld [vmem:[%s412_s18 + $0x8] sm:$0xff]  ;;  %v471_v3 = vstv %s1012_s30  ;;  %s415_s20 = scalar_select %p414_p10, %s997_s10, 0 }
  0x2e   : > { %1055 = vmatprep.mubr.msk.f32.mxu0 %vm476_vm0, %v457_v1  ;;  %v472_v4 = vsub.f32 %v457_v1, %v471_v3  ;;  %v468_v5 = vstv %s466_s8  ;;  %v473_v6 = vsub.f32 %v458_v2, %v471_v3  ;;  %s1548_s19 = smov (!%p1404_p13, %s429_s19), 3  ;;  %p507_p0 = scmp.gt.s32.totalorder %s1256_s27, 0 }
  0x2f   : > { %1056 = vmatmul.mubr.msk.f32.vlgmr.msra.gmra.mrb[0].mxu0 %vm476_vm0, %v458_v2  ;;  %v513_v7 = vsub.f32 %v457_v1, %v468_v5  ;;  %s1546_s20 = smov (!%p998_p11, %s415_s20), 3  ;;  %s1550_s19 = smov (!%p1404_p13, %s1548_s19), 3  ;;  %v514_v15 = vsub.f32 %v458_v2, %v468_v5 }
  0x30   : > { %v491_v8 = vmul.f32 %v472_v4, %v472_v4  ;;  %v492_v9 = vmul.f32 %v473_v6, %v473_v6  ;;  %1058 = vmatprep.mubr.msk.f32.mxu0 %vm476_vm0, %v457_v1  ;;  %s1032_s22 = sshll.u32 %s1546_s20, 4  ;;  %s1033_s10 = sshll.u32 %s1550_s19, 4 }
  0x31   : > { %v525_v10 = vmul.f32 %v513_v7, %v513_v7  ;;  %s424_s8 = scalar_lea.vmem %s1527_s2, %s1032_s22  ;;  %s440_s17 = scalar_lea.vmem %s1528_s3, %s1033_s10  ;;  %v526_v22 = vmul.f32 %v514_v15, %v514_v15 }
  0x32   : > { %v493_v11 = vsel %vm476_vm0, %v491_v8, 0.0  ;;  %v496_v12 = vsel %vm476_vm0, %v492_v9, 0.0  ;;  %v1418_v13 = vld [vmem:[%s424_s8] sm:$0xff]  ;;  %v1420_v14 = vld [vmem:[%s424_s8 + $0x8] sm:$0xff]  ;;  %s508_s18 = scalar_select %p507_p0, 1, 0 }
  0x33   : > { %494 = vadd.xlane.f32.xlu0 %v493_v11  ;;  %497 = vadd.xlane.f32.xlu1 %v496_v12  ;;  %v527_v16 = vsel %vm476_vm0, %v525_v10, 0.0  ;;  %v469_v17 = vsub.f32 %v1418_v13, %v468_v5  ;;  %v470_v18 = vsub.f32 %v1420_v14, %v468_v5  ;;  %v1431_v21 = vld [vmem:[%s440_s17] sm:$0xff]  ;;  %v1433_v23 = vld [vmem:[%s440_s17 + $0x8] sm:$0xff]  ;;  %v530_v31 = vsel %vm476_vm0, %v526_v22, 0.0  ;;  %s550_s19 = scalar_select %p408_p12, 1, 0 }
  0x34   : > { %1059 = vmatmul.mubr.msk.f32.gmra.mrb[2].mxu0 %vm476_vm0, %v458_v2  ;;  %v515_v26 = vsub.f32 %v1431_v21, %v471_v3  ;;  %v516_v27 = vsub.f32 %v1433_v23, %v471_v3  ;;  %v509_v58 = vstv %s508_s18  ;;  %s1034_s20 = sshll.u32 %s1396_s12, 3  ;;  %s1267_s30 = smov 112  }
  0x35   : > { %v483_v19 = vmul.f32 %v469_v17, %v469_v17  ;;  %v484_v20 = vmul.f32 %v470_v18, %v470_v18  ;;  %v474_v32 = vmul.f32 %v472_v4, %v469_v17  ;;  %v475_v34 = vmul.f32 %v473_v6, %v470_v18  ;;  %s453_s23 = scalar_lea.vmem %s1529_s4, %s1034_s20  ;;  %s1268_s12 = smov 96  }
  0x36   : > { %v533_v28 = vmul.f32 %v515_v26, %v515_v26  ;;  %v534_v29 = vmul.f32 %v516_v27, %v516_v27  ;;  %v517_v36 = vmul.f32 %v515_v26, %v513_v7  ;;  %v518_v38 = vmul.f32 %v516_v27, %v514_v15  ;;  %s405_s8 = sand.u32 1, %s1248_s25  }
  0x37   : > { %528 = vadd.xlane.f32.xlu0 %v527_v16  ;;  %v485_v24 = vsel %vm476_vm0, %v483_v19, 0.0  ;;  %v488_v25 = vsel %vm476_vm0, %v484_v20, 0.0  ;;  %v477_v35 = vsel %vm476_vm0, %v474_v32, 0.0  ;;  %v480_v37 = vsel %vm476_vm0, %v475_v34, 0.0  ;;  %s994_s10 = sshll.u32 %s405_s8, 4 }
  0x38   : > { %489 = vadd.xlane.f32.xlu1 %v488_v25  ;;  %v535_v30 = vsel %vm476_vm0, %v533_v28, 0.0  ;;  %v538_v33 = vsel %vm476_vm0, %v534_v29, 0.0  ;;  %v519_v39 = vsel %vm476_vm0, %v517_v36, 0.0  ;;  %v522_v40 = vsel %vm476_vm0, %v518_v38, 0.0  ;;  %s407_s17 = scalar_lea.vmem [#allocation5], %s994_s10 }
  0x39   : > { %vm510_vm1 = vcmp.eq.s32.totalorder %v509_v58, 1  ;;  %v551_v62 = vstv %s550_s19  ;;  %s844_s18 = sshll.u32 %s407_s17, 4  ;;  %s1035_s19 = sshll.u32 %s1256_s27, 8  ;;  %s1475_s18 = int_to_ptr.vmem [resolvable:$true] %s844_s18 }
  0x3a   : > { %vm552_vm2 = vcmp.eq.s32.totalorder %v551_v62, 1  ;;  %s1473_s22 = scalar_lea.hbm %s1532_s7, %s1035_s19  ;;  %s1182_s27 = scalar_lea.vmem %s1475_s18, 256 }
  0x3b   : > { %486 = vadd.xlane.f32.xlu0 %v485_v24  ;;  %p1183_p1 = scmp.ne.s32.totalorder %s1475_s18, %s1182_s27 }
  0x3c   : > { %536 = vadd.xlane.f32.xlu1 %v535_v30 }
  0x3d   : > { %p1184_p2 = pnand %p1183_p1, %p1352_p4 }
  0x3f   : > { %531 = vadd.xlane.f32.xlu0 %v530_v31  ;;  %p1185_p3 = pneg %p1184_p2 }
  0x40   : > { %539 = vadd.xlane.f32.xlu1 %v538_v33 }
  0x43   : > { %478 = vadd.xlane.f32.xlu0 %v477_v35 }
  0x44   : > { %481 = vadd.xlane.f32.xlu1 %v480_v37 }
  0x47   : > { %520 = vadd.xlane.f32.xlu0 %v519_v39 }
  0x48   : > { %523 = vadd.xlane.f32.xlu1 %v522_v40 }
  0xc0   : > { %v495_v41 = vpop.xlane.xlu0 %494  ;;  %v498_v42 = vpop.xlane.xlu1 %497 }
  0xc4   : > { %v529_v43 = vpop.xlane.xlu0 %528 }
  0xc5   : > { %v490_v44 = vpop.xlane.xlu1 %489 }
  0xc6   : > { %v500_v45 = vmul.f32 %v498_v42, %v490_v44 }
  0xc8   : > { %v487_v46 = vpop.xlane.xlu0 %486  ;;  %v502_v48 = vmax.f32 %v500_v45, 1e-16 }
  0xc9   : > { %v499_v47 = vmul.f32 %v495_v41, %v487_v46  ;;  %v537_v49 = vpop.xlane.xlu1 %536 }
  0xca   : > { %1155 = vrsqrt.f32 %v502_v48  ;;  %v541_v51 = vmul.f32 %v537_v49, %v529_v43 }
  0xcb   : > { %v501_v50 = vmax.f32 %v499_v47, 1e-16 }
  0xcc   : > { %v532_v52 = vpop.xlane.xlu0 %531  ;;  %v543_v53 = vmax.f32 %v541_v51, 1e-16 }
  0xcd   : > { %1157 = vrsqrt.f32 %v501_v50  ;;  %v540_v54 = vpop.xlane.xlu1 %539  ;;  %v1023_v50 = vld [vmem:[%s1531_s6] ss:$0 sm:$0xff] }
  0xce   : > { %1159 = vrsqrt.f32 %v543_v53  ;;  %v542_v55 = vmul.f32 %v540_v54, %v532_v52 }
  0xd0   : > { %v544_v56 = vmax.f32 %v542_v55, 1e-16  ;;  %v479_v57 = vpop.xlane.xlu0 %478 }
  0xd1   : > { %v482_v59 = vpop.xlane.xlu1 %481 }
  0xd2   : > { %1161 = vrsqrt.f32 %v544_v56 }
  0xd4   : > { %v1156_v60 = vpop.eup %1155  ;;  %v521_v0 = vpop.xlane.xlu0 %520 }
  0xd5   : > { %v506_v61 = vmul.f32 %v1156_v60, %v482_v59  ;;  %v524_v8 = vpop.xlane.xlu1 %523 }
  0xd7   : > { %v1158_v63 = vpop.eup %1157  ;;  %v512_v2 = vsel %vm510_vm1, %v506_v61, 0.0 }
  0xd8   : > { %v505_v1 = vmul.f32 %v1158_v63, %v479_v57  ;;  %v1160_v3 = vpop.eup %1159  ;;  %v556_v5 = vmul.f32 %v512_v2, %v1420_v14 }
  0xd9   : > { %v547_v6 = vmul.f32 %v1160_v3, %v521_v0 }
  0xda   : > { %v511_v4 = vsel %vm510_vm1, %v505_v1, 0.0 }
  0xdb   : > { %v555_v7 = vmul.f32 %v511_v4, %v1418_v13  ;;  %v553_v9 = vsel %vm552_vm2, %v547_v6, 0.0  ;;  %v1037_v13 = vld [vmem:[%s453_s23] sm:$0xff]   ;;  %s1479_s23 = scalar_lea.sflag [#allocation3], %s405_s8 }
  0xdc   : > { %v1162_v10 = vpop.eup %1161  ;;  %v557_v11 = vmul.f32 %v553_v9, %v1431_v21  ;;  %v1038_v14 = vunpack.c.l.bf16 %v1037_v13  ;;  %v1039_v17 = vunpack.c.h.bf16 %v1037_v13 }
  0xdd   : > { %1061 = vmatprep.mubr.msk.f32.mxu0 %vm476_vm0, %v555_v7  ;;  %v548_v12 = vmul.f32 %v1162_v10, %v524_v8 }
  0xde   : > { %1062 = vmatmul.mubr.msk.f32.gmra.mrb[4].mxu0 %vm476_vm0, %v556_v5  ;;  %1064 = vmatprep.mubr.msk.f32.mxu1 %vm476_vm0, %v557_v11  ;;  %v783_v18 = vsel %vm701_vm3, %v1038_v14, 0.0  ;;  %v786_v21 = vsel %vm701_vm3, %v1039_v17, 0.0 }
  0xdf   : > { %v554_v15 = vsel %vm552_vm2, %v548_v12, 0.0  ;;  %784 = vadd.xlane.f32.xlu1 %v783_v18 }
  0xe0   : > { %v558_v16 = vmul.f32 %v554_v15, %v1433_v23 }
  0xe2   : > { %1065 = vmatmul.mubr.msk.f32.vlgmr.msra.gmra.mrb[0].mxu1 %vm476_vm0, %v558_v16 }
  0xe3   : > { %1071 = vmatprep.mubr.msk.f32.mxu1 %vm701_vm3, %v1038_v14  ;;  %787 = vadd.xlane.f32.xlu1 %v786_v21 }
 0x102   : > { %v1057_v19 = vpop.f32.mrb[0].mxu0 }
 0x103   : > { %v650_v20 = vpop.f32.mrb[1].mxu0 }
 0x104   : > { %v1150_v22 = vpack.i.bf16 %v1057_v19, %v650_v20 }
 0x106   : > { %1151 = vrot.lane.b32.xlu0 %v1150_v22, %s1267_s30  ;;  %s1269_s30 = smov [#allocation5]  }
 0x107   : > { %v1060_v23 = vpop.f32.mrb[2].mxu0 }
 0x108   : > { %v660_v24 = vpop.f32.mrb[3].mxu0 }
 0x16c   : > { %v785_v33 = vpop.xlane.xlu1 %784 }
 0x16d   : > { %v789_v36 = vmax.f32 %v785_v33, 1.0 }
 0x170   : > { %v788_v34 = vpop.xlane.xlu1 %787 }
 0x171   : > { %v790_v35 = vmax.f32 %v788_v34, 1.0 }
 0x173   : > { %1163 = vrcp.f32 %v790_v35 }
 0x174   : > { %1165 = vrcp.f32 %v789_v36 }
 0x178   : > { %v1152_v25 = vpop.permute.xlu0 %1151 }
 0x179   : > { %v1154_v26 = vunpack.i.h.bf16 %v1152_v25  ;;  %v1153_v27 = vunpack.i.l.bf16 %v1152_v25 }
 0x17b   : > { %v1074_v28 = vpack.c.bf16 %v1154_v26, %v1153_v27 }
 0x17d   : > { %1075 = vmatprep.subr.bf16.mxu1 %v1074_v28  ;;  %v1164_v37 = vpop.eup %1163 }
 0x17e   : > { %1077 = vmatpush3.bf16.msra.mxu1 %v1074_v28  ;;  %v1166_v40 = vpop.eup %1165 }
 0x181   : > { %1072 = vmatmul.mubr.msk.f32.vlgmr.msra.gmra.mrb[2].mxu1 %vm701_vm3, %v1039_v17 }
 0x1b1   : > { %v1063_v29 = vpop.f32.mrb[4].mxu0 }
 0x1b2   : > { %v670_v30 = vpop.f32.mrb[5].mxu0  ;;  %801 = vrot.lane.b32.xlu0 %v1063_v29, %s1268_s12 }
 0x1b3   : > { %799 = vrot.lane.b32.xlu1 %v670_v30, %s1268_s12 }
 0x1b5   : > { %v1066_v31 = vpop.f32.mrb[0].mxu1 }
 0x1b6   : > { %v680_v32 = vpop.f32.mrb[1].mxu1  ;;  %811 = vrot.lane.b32.xlu0 %v1066_v31, %s1268_s12 }
 0x1b7   : > { %809 = vrot.lane.b32.xlu1 %v680_v32, %s1268_s12  ;;  %s1186_s12 = sshll.u32 %s1269_s30, 4  ;;  %s1187_s12 = int_to_ptr.vmem [resolvable:$false] %s1186_s12 }
 0x1b8   : > { %s1188_s10 = scalar_lea.vmem %s1187_s12, 512  ;;  %p1189_p5 = scmp.lt.s32.totalorder %s1475_s18, %s1187_s12 }
 0x1b9   : > { %p1190_p6 = scmp.lt.s32.totalorder %s1188_s10, %s1182_s27 }
 0x1bb   : > { %p1191_p7 = por %p1190_p6, %p1189_p5 }
 0x1bd   : > { %p1192_p9 = pnand %p1191_p7, %p1185_p3 }
 0x224   : > { %v802_v38 = vpop.permute.xlu0 %801 }
 0x225   : > { %v800_v41 = vpop.permute.xlu1 %799 }
 0x228   : > { %v812_v47 = vpop.permute.xlu0 %811 }
 0x229   : > { %v810_v49 = vpop.permute.xlu1 %809 }
 0x254   : > { %v1073_v39 = vpop.f32.mrb[2].mxu1 }
 0x255   : > { %v794_v42 = vmul.f32 %v1164_v37, %v1073_v39  ;;  %v774_v43 = vpop.f32.mrb[3].mxu1 }
 0x256   : > { %v792_v44 = vmul.f32 %v1166_v40, %v774_v43 }
 0x257   : > { %v796_v45 = vadd.f32 %v1060_v23, %v794_v42 }
 0x258   : > { %v795_v46 = vadd.f32 %v792_v44, %v660_v24 }
 0x259   : > { %v806_v48 = vadd.f32 %v802_v38, %v796_v45 }
 0x25a   : > { %v805_v51 = vadd.f32 %v800_v41, %v795_v46 }
 0x25b   : > { %v816_v52 = vadd.f32 %v812_v47, %v806_v48 }
 0x25c   : > { %v815_v53 = vadd.f32 %v810_v49, %v805_v51 }
 0x25d   : > { %v825_v54 = vadd.f32 %v1023_v50, %v816_v52 }
 0x25e   : > { %v824_v55 = vadd.f32 %v1023_v50, %v815_v53 }
 0x25f   : > { %827 = vst.msk [vmem:[%s407_s17 + $0x8] sm:$0xff] %vm701_vm3, %v825_v54 }
 0x260   : > { %826 = vst.msk [vmem:[%s407_s17] sm:$0xff] %vm701_vm3, %v824_v55 }
 0x261   : > { %1195 = shalt.err (!%p1192_p9)
}
 0x262   : > { %s1196_s8 = scalar_lea.hbm %s1473_s22, 256  ;;  %s1200_s17 = scalar_lea.hbm %s1532_s7, 1024 }
 0x263   : > { %p1197_p12 = scmp.ne.s32.totalorder %s1473_s22, %s1196_s8  ;;  %p1201_p13 = scmp.lt.u32.totalorder %s1473_s22, %s1532_s7 }
 0x264   : > { %p1202_p0 = scmp.lt.u32.totalorder %s1200_s17, %s1196_s8  ;;  %p1204_p2 = scmp.lt.u32.totalorder %s1196_s8, %s1473_s22 }
 0x265   : > { %p1198_p10 = pnand %p1197_p12, %p1352_p4 }
 0x266   : > { %p1203_p1 = por %p1202_p0, %p1201_p13 }
 0x267   : > { %p1199_p11 = pneg %p1198_p10 }
 0x268   : > { %p1205_p3 = por %p1204_p2, %p1203_p1 }
 0x26a   : > { %p1206_p5 = pnand %p1205_p3, %p1199_p11 }
 0x26c   : > { %1209 = shalt.err (!%p1206_p5)
}
 0x26d   : > { %s1270_s21 = smov 128   ;;  %s1271_s27 = smov 8  }
 0x26e   : > { %1084 = dma.vmem_to_hbm [thread:$0]  (%p1352_p4), %s1475_s18, 256, %s1473_s22, %s1479_s23, %s1270_s21, %s1270_s21, %s1271_s27  }
 0x26f PF: > { %p1096_p6 = scmp.ge.s32.totalorder %s1264_s29, 2  ;;  %s859_s30 = sand.u32 1, %s1244_s24  }
 0x270   : > { %s860_s12 = scalar_lea.sflag [#allocation3], %s859_s30 }
 0x271   : > { %p1091_p7 = pnand %p1096_p6, %p1359_p8 }
 0x273   : > { %1239 = dma.done.wait (!%p1091_p7), %s860_s12, 256  }
 0x274   : > { %1241 = vsyncadd (!%p1091_p7), %s860_s12, 4294967040  ;;  %s21_s29 = sadd.s32 1, %s1264_s29   ;;  %s1538_s24 = smov %s1248_s25 }
 0x275   : > { %p18_p9 = scmp.ge.s32.totalorder %s21_s29, 6   ;;  %s1539_s25 = smov %s1252_s26 }
 0x276   : > { %s1540_s26 = smov %s1365_s14  ;;  %s1541_s27 = smov %s1260_s28 }
 0x277   : > { %s1542_s28 = smov %s1544_s9  ;;  %20 = sbr.rel (!%p18_p9) target bundleno = 5 (0x5), region = 98 }
 0x27e   :  { %865 = vsyncpa [#allocation3], 1 }
 0x27f   :  { %867 = vsyncpa [#allocation3 + $0x1], 1 }
 0x280   :  { %868 = vsyncpa [#allocation4], 1 }
 0x281   :  { %870 = vsyncpa [#allocation4 + $0x1], 1 }

</bundles_post_ra>
